<compile_context>
chip_gen: v7x
topology: tpu7x:2x2x1
jax: 0.10.0
libtpu: 0.0.40
codegen_flags: <defaults>
</compile_context>

<pallas_src>
import functools

import jax
import jax.numpy as jnp
from jax.experimental import pallas as pl
from jax.experimental.pallas import tpu as pltpu


# ----------------------------- init-time parameter construction (plain JAX) -----------------------------

def _circle_filter(H, W, r, lamb):
    """Exact port of SPF._CircleFilter (torch.meshgrid default indexing='ij')."""
    X = jnp.broadcast_to(jnp.arange(H, dtype=jnp.float32)[:, None], (H, W))
    Y = jnp.broadcast_to(jnp.arange(W, dtype=jnp.float32)[None, :], (H, W))
    x_center = W // 2
    y_center = H // 2
    circle = jnp.sqrt((X - x_center) ** 2 + (Y - y_center) ** 2)
    lp = (circle < r).astype(jnp.float32)
    hp = (circle > r).astype(jnp.float32)
    comb = lp * lamb + hp * (1.0 - lamb)
    comb = jnp.where(~(circle < r) & ~(circle > r), jnp.float32(1.0 / 3.0), comb)
    return comb  # (H, W)


def _spectral_operator(filt):
    """Fold ortho FFT2 -> (ifftshift-ed) filter multiply -> ortho IFFT2 -> real into one
    real (H*W, H*W) matrix, returned transposed so that  y_rows = x_rows @ Op."""
    H, W = filt.shape
    HW = H * W
    g = jnp.fft.ifftshift(filt.astype(jnp.float32), axes=(-2, -1)).reshape(HW)

    kh = jnp.arange(H, dtype=jnp.float32)
    kw = jnp.arange(W, dtype=jnp.float32)
    Fh = jnp.exp(-2j * jnp.pi * jnp.outer(kh, kh) / H) / jnp.sqrt(jnp.float32(H))
    Fw = jnp.exp(-2j * jnp.pi * jnp.outer(kw, kw) / W) / jnp.sqrt(jnp.float32(W))
    Ih = jnp.conj(Fh)
    Iw = jnp.conj(Fw)

    # Row-major vec identity: vec(M @ X @ N) = kron(M, N^T) @ vec(X).
    fwd = jnp.kron(Fh, Fw.T)   # spectrum = fwd @ vec(x)
    inv = jnp.kron(Ih, Iw.T)   # image    = inv @ spectrum
    A = jnp.matmul(inv * g[None, :], fwd, precision=jax.lax.Precision.HIGHEST)  # one-time
    # x is real -> y_vec = real(A) @ x_vec  ->  y_rows = x_rows @ real(A).T
    return jnp.real(A).T.astype(jnp.float32)  # (HW, HW)


def _round_up(n, m):
    return ((n + m - 1) // m) * m


# ----------------------------- Pallas kernel -----------------------------

def _spf_kernel(x_ref, op_ref, o_ref):
    # f32 activations are cast to bf16 in-kernel (co-issues on the VPU, hides under MXU/DMA);
    # bf16 x bf16 -> f32 accumulate is the native single-pass MXU path on v5e/v6e/v7x.
    o_ref[...] = jnp.dot(
        x_ref[...].astype(jnp.bfloat16), op_ref[...],
        preferred_element_type=jnp.float32,
    ).astype(o_ref.dtype)


def spf_forward(x, op_bf16, *, max_row_tile=2048):
    """x: (B, C, H, W) real; op_bf16: (H*W, H*W) fused spectral operator (bf16), precomputed once."""
    B, C, H, W = x.shape
    HW = H * W
    # TODO(synk): the padding branch of SPF.forward (filter smaller than the input, which mutates
    # self.filter in place) is not implemented; only the equal-size path is.
    assert op_bf16.shape == (HW, HW)
    # TODO(synk): the fused operator is (H*W)^2 elements; for large spatial dims a per-image
    # batched DFT-matmul kernel would be preferable to this constant.

    n = B * C
    x_rows = x.reshape(n, HW)  # keep f32 in HBM; the bf16 cast is fused into the kernel

    # Row tile: multiple of 16 (bf16 packs [16,128] per vreg along sublanes), capped at 2048 rows
    # so the double-buffered working set (~8 MiB) fits v5e's 16 MiB scoped-VMEM default.
    tile = min(max_row_tile, _round_up(n, 16))
    row_blocks = pl.cdiv(n, tile)  # no wrapper-side pad: trailing partial block is masked

    # v7x has 2 TensorCores: if there aren't at least two row tiles, split the output columns
    # into two lane-dense (128-wide) blocks instead so both cores get work. No-op perf-wise on
    # v5e/v6e (1 TC) at this tiny size.
    if row_blocks < 2 and HW % 256 == 0:
        col_tile = HW // 2
    else:
        col_tile = HW
    col_blocks = HW // col_tile

    y_rows = pl.pallas_call(
        _spf_kernel,
        out_shape=jax.ShapeDtypeStruct((n, HW), x.dtype),
        grid=(row_blocks, col_blocks),
        in_specs=[
            pl.BlockSpec((tile, HW), lambda i, j: (i, 0)),        # activations (lane-dense)
            # Operator block index is constant in the row axis: Mosaic skips the re-copy when the
            # block index is unchanged across grid steps, so it is fetched once per column block.
            pl.BlockSpec((HW, col_tile), lambda i, j: (0, j)),
        ],
        out_specs=pl.BlockSpec((tile, col_tile), lambda i, j: (i, j)),
        compiler_params=pltpu.CompilerParams(
            dimension_semantics=("parallel", "parallel")),
        cost_estimate=pl.CostEstimate(
            flops=2 * n * HW * HW,
            bytes_accessed=n * HW * 4 + HW * HW * 2 + n * HW * 4,
            transcendentals=0),
    )(x_rows, op_bf16)

    return y_rows.reshape(B, C, H, W)


def make_spf(H, W, r, lamb):
    """Init-time factory (mirrors SPF.__init__): builds the frozen filter and folds the FFT chain
    into the fused (HW, HW) bf16 operator ONCE; returns (filter, jitted forward). The hot path is
    then just the single pallas_call."""
    filt = _circle_filter(H, W, r, lamb)
    op_bf16 = jax.device_put(_spectral_operator(filt).astype(jnp.bfloat16))
    fwd = jax.jit(functools.partial(spf_forward, op_bf16=op_bf16))
    return filt, fwd


# ----------------------------- pure-JAX reference (correctness check) -----------------------------

def spf_reference(x, filt):
    xf = jnp.fft.fftshift(jnp.fft.fft2(x, axes=(2, 3), norm="ortho"), axes=(2, 3))
    xf = filt[None, None] * xf
    y = jnp.fft.ifft2(jnp.fft.ifftshift(xf, axes=(2, 3)), axes=(2, 3), norm="ortho").real
    return y.astype(x.dtype)


# ----------------------------- main -----------------------------

if __name__ == "__main__":
    B, C, H, W = 2, 4, 16, 16
    r, lamb = 4, 0.7

    key = jax.random.PRNGKey(0)
    x = jax.random.normal(key, (B, C, H, W), dtype=jnp.float32)

    filt, spf = make_spf(H, W, r, lamb)   # operator folded & cached once at init

    y = jax.block_until_ready(spf(x))
    y_ref = jax.block_until_ready(spf_reference(x, filt))

    assert y.shape == (B, C, H, W) and y.dtype == x.dtype
    # bf16 quantization of the operator / activations bounds abs error around ~3e-3 for N(0,1)
    # inputs over the fused 256-wide contraction; assert with comfortable margin.
    assert jnp.allclose(y, y_ref, atol=1e-2, rtol=1e-2), float(jnp.max(jnp.abs(y - y_ref)))

    print("KERNEL_OK")
</pallas_src>

<mosaic_0001>
module attributes {stable_mosaic.version = 11 : i64} {
  func.func @_spf_kernel(%arg0: i32, %arg1: i32, %arg2: memref<16x256xf32, #tpu.memory_space<vmem>>, %arg3: memref<256x128xbf16, #tpu.memory_space<vmem>>, %arg4: memref<16x128xf32, #tpu.memory_space<vmem>>) attributes {dimension_semantics = [#tpu.dimension_semantics<parallel>, #tpu.dimension_semantics<parallel>], iteration_bounds = array<i64: 1, 2>, scalar_prefetch = 0 : i64, scratch_operands = 0 : i64, tpu.core_type = #tpu.core_type<tc>, window_params = [{transform_indices = @transform_0, window_bounds = array<i64: 16, 256>}, {transform_indices = @transform_1, window_bounds = array<i64: 256, 128>}, {transform_indices = @transform_2, window_bounds = array<i64: 16, 128>}]} {
    %c0 = arith.constant 0 : index
    %c0_0 = arith.constant 0 : index
    %0 = vector.load %arg2[%c0, %c0_0] : memref<16x256xf32, #tpu.memory_space<vmem>>, vector<16x256xf32>
    %1 = arith.truncf %0 : vector<16x256xf32> to vector<16x256xbf16>
    %c0_1 = arith.constant 0 : index
    %c0_2 = arith.constant 0 : index
    %2 = vector.load %arg3[%c0_1, %c0_2] : memref<256x128xbf16, #tpu.memory_space<vmem>>, vector<256x128xbf16>
    %cst = arith.constant dense<0.000000e+00> : vector<16x128xf32>
    %3 = tpu.matmul %1, %2, %cst {dimension_numbers = #tpu.dot_dimension_numbers<[1], [0], [0], [1], [0, 0, 1, 1], [], []>} : vector<16x256xbf16>, vector<256x128xbf16>, vector<16x128xf32> -> vector<16x128xf32>
    %c0_3 = arith.constant 0 : index
    %c0_4 = arith.constant 0 : index
    %4 = vector.load %arg4[%c0_3, %c0_4] : memref<16x128xf32, #tpu.memory_space<vmem>>, vector<16x128xf32>
    tpu.vector_store %arg4[%c0_3, %c0_4], %3 {strides = array<i32>} : memref<16x128xf32, #tpu.memory_space<vmem>>, vector<16x128xf32>,
    return
  }
  func.func @transform_0(%arg0: i32, %arg1: i32) -> (i32, i32) {
    %c0_i32 = arith.constant 0 : i32
    %c0_i32_0 = arith.constant 0 : i32
    return %arg0, %c0_i32 : i32, i32
  }
  func.func @transform_1(%arg0: i32, %arg1: i32) -> (i32, i32) {
    %c0_i32 = arith.constant 0 : i32
    %c0_i32_0 = arith.constant 0 : i32
    return %c0_i32, %arg1 : i32, i32
  }
  func.func @transform_2(%arg0: i32, %arg1: i32) -> (i32, i32) {
    %c0_i32 = arith.constant 0 : i32
    return %arg0, %arg1 : i32, i32
  }
}

</mosaic_0001>

<bundles_post_ra>
// kernel: spf_forward.1
= control target key start
LH: loop header
LB: loop body
LE: loop exit
PB: predicated region body
PF: predicated region fallthrough
CT: control target
= control target key end

     0   :  { %s919_s9 = smov 0   ;;  %s921_s10 = smov 0   ;;  %s1093_s0 = inlined_call_operand.vmem [shape: f32[8,256], index: 0, kind: input, shape index: {}]   ;;  %s1094_s1 = inlined_call_operand.vmem [shape: bf16[256,256], index: 1, kind: input, shape index: {}]   ;;  %s1095_s2 = inlined_call_operand.vmem [shape: f32[8,256], index: 2, kind: output, shape index: {}]  }
   0x1   :  { %s923_s11 = smov 0   ;;  %s925_s12 = smov 0  }
   0x2   :  { %s927_s13 = smov 0  }
   0x3 LB: > { %s21_s14 = sadd.s32 1, %s894_s12  ;;  %s702_s15 = sadd.s32 4294967295, %s898_s13   ;;  %s898_s13 = sphi %s927_s13, %s12_s13   ;;  %s894_s12 = sphi %s925_s12, %s1100_s12   ;;  %s890_s11 = sphi %s923_s11, %s1099_s11   ;;  %s886_s10 = sphi %s921_s10, %s1098_s10   ;;  %s882_s9 = sphi %s919_s9, %s1097_s9  }
   0x4   : > { %p22_p0 = scmp.ge.s32.totalorder %s21_s14, 2  ;;  %p64_p1 = scmp.ne.s32.totalorder %s886_s10, %s882_s9 }
   0x5   : > { %p65_p2 = scmp.eq.s32.totalorder %s898_s13, 0  ;;  %p96_p4 = scmp.eq.s32.totalorder %s702_s15, 1 }
   0x6   : > { %s1102_s14 = smov (%p22_p0, %s21_s14), 0  ;;  %s57_s17 = sadd.s32 1, %s886_s10 }
   0x7   : > { %p66_p3 = por %p65_p2, %p64_p1  ;;  %s54_s16 = ssub.s32 %s894_s12, %s1102_s14 }
   0x8   : > { %p55_p5 = scmp.eq.s32.totalorder %s54_s16, 0  ;;  %p954_p6 = por %p96_p4, %p64_p1 }
   0x9   : > { %p706_p7 = scmp.ge.s32.totalorder %s898_s13, 2 }
   0xa   : > { %s959_s19 = scalar_select %p55_p5, %s886_s10, %s57_s17  }
   0xb   : > { %134 = sbr.rel (%p706_p7) target bundleno = 43 (0x2b), region = 20 }
  0x12   : > { %137 = sbr.rel (!%p66_p3) target bundleno = 43 (0x2b), region = 24  ;;  %s139_s20 = sand.u32 (%p66_p3), 1, %s886_s10  }
  0x13   : > { %s708_s21 = sshll.u32 (%p66_p3), %s894_s12, 2  ;;  %s707_s22 = sshll.u32 (%p66_p3), %s139_s20, 7 }
  0x14   : > { %s967_s25 = scalar_lea.vmem (%p66_p3), %s1094_s1, %s708_s21  ;;  %s971_s26 = scalar_lea.vmem (%p66_p3), [#allocation2], %s707_s22 }
  0x15   : > { %v159_v0 = vld [vmem:[%s967_s25] sm:$0xf] (%p66_p3)  ;;  %v161_v1 = vld [vmem:[%s967_s25 + $0x8] sm:$0xf] (%p66_p3)  ;;  %v163_v2 = vld [vmem:[%s967_s25 + $0x10] sm:$0xf] (%p66_p3) }
  0x16   : > { %160 = vst [vmem:[%s971_s26] sm:$0xf] (%p66_p3), %v159_v0  ;;  %162 = vst [vmem:[%s971_s26 + $0x4] sm:$0xf] (%p66_p3), %v161_v1  ;;  %v165_v3 = vld [vmem:[%s967_s25 + $0x18] sm:$0xf] (%p66_p3) }
  0x17   : > { %v167_v4 = vld [vmem:[%s967_s25 + $0x20] sm:$0xf] (%p66_p3)  ;;  %164 = vst [vmem:[%s971_s26 + $0x8] sm:$0xf] (%p66_p3), %v163_v2  ;;  %166 = vst [vmem:[%s971_s26 + $0xc] sm:$0xf] (%p66_p3), %v165_v3 }
  0x18   : > { %168 = vst [vmem:[%s971_s26 + $0x10] sm:$0xf] (%p66_p3), %v167_v4  ;;  %v169_v5 = vld [vmem:[%s967_s25 + $0x28] sm:$0xf] (%p66_p3)  ;;  %v171_v6 = vld [vmem:[%s967_s25 + $0x30] sm:$0xf] (%p66_p3) }
  0x19   : > { %v173_v7 = vld [vmem:[%s967_s25 + $0x38] sm:$0xf]  ;;  %170 = vst [vmem:[%s971_s26 + $0x14] sm:$0xf] %v169_v5  ;;  %172 = vst [vmem:[%s971_s26 + $0x18] sm:$0xf] %v171_v6 }
  0x1a   : > { %174 = vst [vmem:[%s971_s26 + $0x1c] sm:$0xf] %v173_v7  ;;  %v175_v8 = vld [vmem:[%s967_s25 + $0x40] sm:$0xf]  ;;  %v177_v9 = vld [vmem:[%s967_s25 + $0x48] sm:$0xf] }
  0x1b   : > { %v179_v10 = vld [vmem:[%s967_s25 + $0x50] sm:$0xf]  ;;  %176 = vst [vmem:[%s971_s26 + $0x20] sm:$0xf] %v175_v8  ;;  %178 = vst [vmem:[%s971_s26 + $0x24] sm:$0xf] %v177_v9 }
  0x1c   : > { %180 = vst [vmem:[%s971_s26 + $0x28] sm:$0xf] %v179_v10  ;;  %v181_v11 = vld [vmem:[%s967_s25 + $0x58] sm:$0xf]  ;;  %v183_v12 = vld [vmem:[%s967_s25 + $0x60] sm:$0xf] }
  0x1d   : > { %v185_v13 = vld [vmem:[%s967_s25 + $0x68] sm:$0xf]  ;;  %182 = vst [vmem:[%s971_s26 + $0x2c] sm:$0xf] %v181_v11  ;;  %184 = vst [vmem:[%s971_s26 + $0x30] sm:$0xf] %v183_v12 }
  0x1e   : > { %186 = vst [vmem:[%s971_s26 + $0x34] sm:$0xf] %v185_v13  ;;  %v187_v14 = vld [vmem:[%s967_s25 + $0x70] sm:$0xf]  ;;  %v189_v15 = vld [vmem:[%s967_s25 + $0x78] sm:$0xf] }
  0x1f   : > { %v191_v16 = vld [vmem:[%s967_s25 + $0x80] sm:$0xf]  ;;  %188 = vst [vmem:[%s971_s26 + $0x38] sm:$0xf] %v187_v14  ;;  %190 = vst [vmem:[%s971_s26 + $0x3c] sm:$0xf] %v189_v15 }
  0x20   : > { %192 = vst [vmem:[%s971_s26 + $0x40] sm:$0xf] %v191_v16  ;;  %v193_v17 = vld [vmem:[%s967_s25 + $0x88] sm:$0xf]  ;;  %v195_v18 = vld [vmem:[%s967_s25 + $0x90] sm:$0xf] }
  0x21   : > { %v197_v19 = vld [vmem:[%s967_s25 + $0x98] sm:$0xf]  ;;  %194 = vst [vmem:[%s971_s26 + $0x44] sm:$0xf] %v193_v17  ;;  %196 = vst [vmem:[%s971_s26 + $0x48] sm:$0xf] %v195_v18 }
  0x22   : > { %198 = vst [vmem:[%s971_s26 + $0x4c] sm:$0xf] %v197_v19  ;;  %v199_v20 = vld [vmem:[%s967_s25 + $0xa0] sm:$0xf]  ;;  %v201_v21 = vld [vmem:[%s967_s25 + $0xa8] sm:$0xf] }
  0x23   : > { %v203_v22 = vld [vmem:[%s967_s25 + $0xb0] sm:$0xf]  ;;  %200 = vst [vmem:[%s971_s26 + $0x50] sm:$0xf] %v199_v20  ;;  %202 = vst [vmem:[%s971_s26 + $0x54] sm:$0xf] %v201_v21 }
  0x24   : > { %204 = vst [vmem:[%s971_s26 + $0x58] sm:$0xf] %v203_v22  ;;  %v205_v23 = vld [vmem:[%s967_s25 + $0xb8] sm:$0xf]  ;;  %v207_v24 = vld [vmem:[%s967_s25 + $0xc0] sm:$0xf] }
  0x25   : > { %v209_v25 = vld [vmem:[%s967_s25 + $0xc8] sm:$0xf]  ;;  %206 = vst [vmem:[%s971_s26 + $0x5c] sm:$0xf] %v205_v23  ;;  %208 = vst [vmem:[%s971_s26 + $0x60] sm:$0xf] %v207_v24 }
  0x26   : > { %210 = vst [vmem:[%s971_s26 + $0x64] sm:$0xf] %v209_v25  ;;  %v211_v26 = vld [vmem:[%s967_s25 + $0xd0] sm:$0xf]  ;;  %v213_v27 = vld [vmem:[%s967_s25 + $0xd8] sm:$0xf] }
  0x27   : > { %v215_v28 = vld [vmem:[%s967_s25 + $0xe0] sm:$0xf]  ;;  %212 = vst [vmem:[%s971_s26 + $0x68] sm:$0xf] %v211_v26  ;;  %214 = vst [vmem:[%s971_s26 + $0x6c] sm:$0xf] %v213_v27 }
  0x28   : > { %216 = vst [vmem:[%s971_s26 + $0x70] sm:$0xf] %v215_v28  ;;  %v217_v29 = vld [vmem:[%s967_s25 + $0xe8] sm:$0xf]  ;;  %v219_v30 = vld [vmem:[%s967_s25 + $0xf0] sm:$0xf] }
  0x29   : > { %v221_v31 = vld [vmem:[%s967_s25 + $0xf8] sm:$0xf]  ;;  %218 = vst [vmem:[%s971_s26 + $0x74] sm:$0xf] %v217_v29  ;;  %220 = vst [vmem:[%s971_s26 + $0x78] sm:$0xf] %v219_v30 }
  0x2a   : > { %222 = vst [vmem:[%s971_s26 + $0x7c] sm:$0xf] %v221_v31 }
  0x2b PF: > { %p709_p8 = scmp.ge.s32.totalorder %s898_s13, 1  ;;  %p308_p9 = scmp.lt.s32.totalorder %s898_s13, 3 }
  0x2d   : > { %p309_p10 = pnand %p709_p8, %p308_p9 }
  0x2e   : > { %s315_s27 = sand.u32 (!%p309_p10), 1, %s882_s9   ;;  %v362_v32 = vld [vmem:[%s1093_s0 + $0x8] sm:$0xff] (!%p309_p10)  ;;  %v364_v33 = vld [vmem:[%s1093_s0 + $0x18] sm:$0xff] (!%p309_p10)  ;;  %v361_v51 = vld [vmem:[%s1093_s0] sm:$0xff] (!%p309_p10) }
  0x2f   : > { %312 = sbr.rel (%p309_p10) target bundleno = 308 (0x134), region = 65  ;;  %s710_s4 = sshll.u32 (!%p309_p10), %s315_s27, 7  ;;  %v366_v34 = vpack.c.bf16 (!%p309_p10), %v364_v33, %v362_v32  ;;  %v363_v52 = vld [vmem:[%s1093_s0 + $0x10] sm:$0xff] (!%p309_p10) }
  0x30   : > { %s1046_s5 = scalar_lea.vmem (!%p309_p10), [#allocation2], %s710_s4  ;;  %v365_v53 = vpack.c.bf16 (!%p309_p10), %v363_v52, %v361_v51  ;;  %s711_s16 = sshll.u32 (!%p309_p10), %s315_s27, 4 }
  0x31   : > { %v828_v35 = vld [vmem:[%s1046_s5 + $0x40] sm:$0xff] (!%p309_p10)   ;;  %527 = vmatprep.mubr.bf16.mxu0 (!%p309_p10), %v366_v34  ;;  %v830_v37 = vld [vmem:[%s1046_s5 + $0x48] sm:$0xff] (!%p309_p10)   ;;  %v832_v39 = vld [vmem:[%s1046_s5 + $0x50] sm:$0xff] (!%p309_p10)   ;;  %s343_s17 = scalar_lea.vmem (!%p309_p10), [#allocation3], %s711_s16  }
  0x32   : > { %v829_v36 = vld [vmem:[%s1046_s5] sm:$0xff] (!%p309_p10)   ;;  %734 = vmatprep.subr.bf16.mxu0 (!%p309_p10), %v828_v35  ;;  %v831_v38 = vld [vmem:[%s1046_s5 + $0x8] sm:$0xff] (!%p309_p10)   ;;  %v833_v40 = vld [vmem:[%s1046_s5 + $0x10] sm:$0xff] (!%p309_p10)  }
  0x33   : > { %735 = vmatpush3.bf16.msra.mxu0 (!%p309_p10), %v829_v36  ;;  %v834_v41 = vld [vmem:[%s1046_s5 + $0x58] sm:$0xff] (!%p309_p10)   ;;  %v836_v43 = vld [vmem:[%s1046_s5 + $0x60] sm:$0xff] (!%p309_p10)   ;;  %v838_v45 = vld [vmem:[%s1046_s5 + $0x68] sm:$0xff] (!%p309_p10)  }
  0x34   : > { %736 = vmatprep.subr.bf16.mxu0 (!%p309_p10), %v830_v37  ;;  %v835_v42 = vld [vmem:[%s1046_s5 + $0x18] sm:$0xff] (!%p309_p10)   ;;  %v837_v44 = vld [vmem:[%s1046_s5 + $0x20] sm:$0xff] (!%p309_p10)   ;;  %v839_v46 = vld [vmem:[%s1046_s5 + $0x28] sm:$0xff] (!%p309_p10)  }
  0x35   : > { %v840_v47 = vld [vmem:[%s1046_s5 + $0x70] sm:$0xff] (!%p309_p10)   ;;  %v842_v49 = vld [vmem:[%s1046_s5 + $0x78] sm:$0xff] (!%p309_p10)  }
  0x36   : > { %v841_v48 = vld [vmem:[%s1046_s5 + $0x30] sm:$0xff]   ;;  %v843_v50 = vld [vmem:[%s1046_s5 + $0x38] sm:$0xff]   ;;  %s729_s20 = sshll.u32 (%p954_p6), %s890_s11, 3  ;;  %s900_s24 = smov (%p954_p6), 0  }
  0x37   : > { %737 = vmatpush3.bf16.msra.mxu0 %v831_v38  ;;  %s552_s23 = scalar_lea.vmem (%p954_p6), %s1095_s2, %s729_s20  }
  0x38   : > { %738 = vmatprep.subr.bf16.mxu0 %v832_v39 }
  0x3b   : > { %739 = vmatpush3.bf16.msra.mxu0 %v833_v40 }
  0x3c   : > { %740 = vmatprep.subr.bf16.mxu0 %v834_v41 }
  0x3f   : > { %741 = vmatpush3.bf16.msra.mxu0 %v835_v42 }
  0x40   : > { %742 = vmatprep.subr.bf16.mxu0 %v836_v43 }
  0x43   : > { %743 = vmatpush3.bf16.msra.mxu0 %v837_v44 }
  0x44   : > { %744 = vmatprep.subr.bf16.mxu0 %v838_v45 }
  0x47   : > { %745 = vmatpush3.bf16.msra.mxu0 %v839_v46 }
  0x48   : > { %746 = vmatprep.subr.bf16.mxu0 %v840_v47 }
  0x4b   : > { %747 = vmatpush3.bf16.msra.mxu0 %v841_v48 }
  0x4c   : > { %748 = vmatprep.subr.bf16.mxu0 %v842_v49 }
  0x4f   : > { %749 = vmatpush3.bf16.msra.mxu0 %v843_v50 }
  0x52   : > { %528 = vmatmul.mubr.bf16.vlgmr.msra.gmra.mrb[0].mxu0 %v365_v53 }
 0x123   : > { %544 = sbr.rel (!%p954_p6) target bundleno = 308 (0x134), region = 73 }
 0x125   : > { %v750_v54 = vpop.f32.mrb[0].mxu0 }
 0x126   : > { %v751_v55 = vpop.f32.mrb[1].mxu0 }
 0x127   : > { %v752_v56 = vadd.f32 %v751_v55, %v750_v54  ;;  %v753_v57 = vpop.f32.mrb[2].mxu0 }
 0x128   : > { %v754_v58 = vpop.f32.mrb[3].mxu0 }
 0x129   : > { %536 = vst [vmem:[%s343_s17] sm:$0xff] %v752_v56 }
 0x12a LB: >> { %s584_s24 = sadd.s32 1, %s902_s24   ;;  %s902_s24 = sphi %s900_s24, %s584_s24  }
 0x12b   : >> { %p583_p11 = scmp.ge.s32.totalorder %s584_s24, 1 }
 0x12d   : > { %586 = sbr.rel (!%p583_p11) target bundleno = 298 (0x12a), region = 145 }
 0x130   : >> { %v590_v59 = vld [vmem:[%s343_s17] sm:$0xff] }
 0x131   : >> { %591 = vst [vmem:[%s552_s23] sm:$0xff] %v590_v59 }
 0x134 PF: > { %s12_s13 = sadd.s32 1, %s898_s13   ;;  %s1097_s9 = smov %s886_s10 }
 0x135   : > { %p9_p12 = scmp.ge.s32.totalorder %s12_s13, 4   ;;  %s1098_s10 = smov %s959_s19 }
 0x136   : > { %s1099_s11 = smov %s894_s12  ;;  %s1100_s12 = smov %s1102_s14 }
 0x137   :  { %11 = sbr.rel (!%p9_p12) target bundleno = 3 (0x3), region = 156 }

</bundles_post_ra>
